<compile_context>
chip_gen: v7x
topology: tpu7x:2x2x1
jax: 0.10.0
libtpu: 0.0.40
codegen_flags: <defaults>
</compile_context>

<pallas_src>
import jax
import jax.numpy as jnp
from jax import lax
from jax.experimental import pallas as pl
from jax.experimental.pallas import tpu as pltpu

STATE_LEN = 99
H1 = 50
H2 = 50
NUM_ELECS = 5
OUT_LEN = 2 * NUM_ELECS  # 10

PAD = 128           # lane-dense padded width for hidden / output layer dims
MAX_TILE_B = 1024   # max batch tile (multiple of 8)
_EPS = 1e-12        # guards division by zero when the regression half is all-zero


def _round_up(n, m):
    return ((n + m - 1) // m) * m


def _cdiv(a, b):
    return (a + b - 1) // b


def _choose_tile(batch):
    """Pick (tile_b, b_pad): minimize padding, keep >=2 grid steps when possible."""
    b8 = _round_up(max(batch, 1), 8)
    if b8 <= 8:
        return 8, 8
    n_steps = max(2, _cdiv(b8, MAX_TILE_B))     # >=2 steps -> both TCs on v7x
    tile_b = _round_up(_cdiv(b8, n_steps), 8)
    b_pad = _round_up(b8, tile_b)
    return tile_b, b_pad


# ---------------------------------------------------------------------------
# Kernel
# ---------------------------------------------------------------------------
def _dnetwork_kernel(x_ref, w_ref, b_ref, o_ref):
    # Packed, zero-padded parameters (static 128-aligned slices -> clean tiles).
    w1 = w_ref[0 * PAD:1 * PAD, :]      # (128, 128); rows >= 99 / cols >= 50 are zero
    w23 = w_ref[1 * PAD:2 * PAD, :]     # (128, 128); folded hidden_2 @ output
    b1 = b_ref[0:1, :]
    b23 = b_ref[1:2, :]

    x = x_ref[...]                      # (TILE_B, 99)
    # Pad to 128 lanes inside the kernel (extra lanes hit zero weight rows).
    zpad = jnp.zeros((x.shape[0], PAD - STATE_LEN), jnp.float32)
    xpad = jnp.concatenate([x, zpad], axis=1)          # (TILE_B, 128)

    # hidden_1 + ReLU
    h1 = jnp.dot(xpad, w1, preferred_element_type=jnp.float32) + b1
    h1 = jnp.maximum(h1, 0.0)
    # hidden_2 (identity activation) fused with output layer: one matmul
    out = jnp.dot(h1, w23, preferred_element_type=jnp.float32) + b23   # (TILE_B, 128)

    # post-processing (per row):
    #   j <  5      : 0 if out[j] <= 0 else 1
    #   5 <= j < 10 : 20 * (out[j] / ||out[5:10]||_2 + 1) + 60
    idx = lax.broadcasted_iota(jnp.int32, out.shape, dimension=1)
    second_mask = jnp.logical_and(idx >= NUM_ELECS, idx < OUT_LEN)

    reg = jnp.where(second_mask, out, 0.0)
    inv_norm = lax.rsqrt(jnp.sum(reg * reg, axis=1, keepdims=True) + _EPS)

    first_half = jnp.where(out <= 0.0, 0.0, 1.0)
    second_half = 20.0 * (out * inv_norm + 1.0) + 60.0

    res = jnp.where(second_mask, second_half, first_half)   # (TILE_B, 128)
    # Write only the 10 useful lanes.
    o_ref[...] = res[:, :OUT_LEN]


# ---------------------------------------------------------------------------
# Parameter packing (done once at init)
# ---------------------------------------------------------------------------
def pack_params(params):
    """(w1,b1,w2,b2,w3,b3) with (in,out) weights -> single padded VMEM blocks.

    hidden_2 and output are both linear, so they are folded:
      w23 = w2 @ w3          (50, 10)
      b23 = b2 @ w3 + b3     (1, 10)
    """
    w1, b1, w2, b2, w3, b3 = params
    w1 = w1.astype(jnp.float32)
    w2 = w2.astype(jnp.float32)
    w3 = w3.astype(jnp.float32)
    b1 = b1.reshape(1, -1).astype(jnp.float32)
    b2 = b2.reshape(1, -1).astype(jnp.float32)
    b3 = b3.reshape(1, -1).astype(jnp.float32)

    w23 = w2 @ w3
    b23 = b2 @ w3 + b3

    def pad_w(w):
        fi, fo = w.shape
        buf = jnp.zeros((PAD, PAD), jnp.float32)
        return buf.at[:fi, :fo].set(w)

    def pad_b(b):
        b = b.reshape(-1)
        buf = jnp.zeros((PAD,), jnp.float32)
        return buf.at[:b.shape[0]].set(b)

    w_all = jnp.concatenate([pad_w(w1), pad_w(w23)], axis=0)   # (256, 128)
    b_all = jnp.zeros((8, PAD), jnp.float32)
    b_all = b_all.at[0].set(pad_b(b1)).at[1].set(pad_b(b23))
    return w_all, b_all


# ---------------------------------------------------------------------------
# Wrapper
# ---------------------------------------------------------------------------
def dnetwork_forward(x, packed_params):
    """x: (STATE_LEN,) or (B, STATE_LEN) float32 -> (OUT_LEN,) or (B, OUT_LEN)."""
    w_all, b_all = packed_params
    squeeze = (x.ndim == 1)
    x2 = (x.reshape(1, STATE_LEN) if squeeze else x).astype(jnp.float32)
    B = x2.shape[0]

    tile_b, b_pad = _choose_tile(B)
    if b_pad != B:
        x2 = jnp.pad(x2, ((0, b_pad - B), (0, 0)))   # row padding only (no lane pad)

    out = pl.pallas_call(
        _dnetwork_kernel,
        out_shape=jax.ShapeDtypeStruct((b_pad, OUT_LEN), jnp.float32),
        grid=(b_pad // tile_b,),
        in_specs=[
            # last dim == full array dim (99) -> exempt from the 128-lane rule
            pl.BlockSpec((tile_b, STATE_LEN), lambda i: (i, 0)),
            pl.BlockSpec((2 * PAD, PAD), lambda i: (0, 0)),    # weights: VMEM-resident
            pl.BlockSpec((8, PAD), lambda i: (0, 0)),          # biases: VMEM-resident
        ],
        # last dim == full array dim (10) -> exempt from the 128-lane rule
        out_specs=pl.BlockSpec((tile_b, OUT_LEN), lambda i: (i, 0)),
        compiler_params=pltpu.CompilerParams(
            dimension_semantics=("parallel",)),
    )(x2, w_all, b_all)

    out = out[:B]
    return out.reshape(OUT_LEN) if squeeze else out


# ---------------------------------------------------------------------------
# Pure-JAX reference (matches PyTorch forward; norm guarded by the same eps)
# ---------------------------------------------------------------------------
def dnetwork_ref(x, params):
    w1, b1, w2, b2, w3, b3 = params
    x2 = x.reshape(-1, STATE_LEN).astype(jnp.float32)
    h1 = jnp.maximum(x2 @ w1 + b1, 0.0)
    h2 = h1 @ w2 + b2
    raw = h2 @ w3 + b3                                   # (B, 10)
    first = jnp.where(raw[:, :NUM_ELECS] <= 0.0, 0.0, 1.0)
    reg = raw[:, NUM_ELECS:]
    inv = lax.rsqrt(jnp.sum(reg * reg, axis=1, keepdims=True) + _EPS)
    second = 20.0 * (reg * inv + 1.0) + 60.0
    y = jnp.concatenate([first, second], axis=1)
    if x.ndim == 1:
        return y.reshape(OUT_LEN), raw.reshape(OUT_LEN)
    return y, raw


# ---------------------------------------------------------------------------
# Init (same fan-in scaling as nn.Linear; weights stored as (in, out))
# ---------------------------------------------------------------------------
def init_params(key):
    ks = jax.random.split(key, 6)

    def lin(kw, kb, fan_in, fan_out):
        bound = 1.0 / jnp.sqrt(jnp.float32(fan_in))
        w = jax.random.uniform(kw, (fan_in, fan_out), jnp.float32,
                               minval=-bound, maxval=bound)
        b = jax.random.uniform(kb, (1, fan_out), jnp.float32,
                               minval=-bound, maxval=bound)
        return w, b

    w1, b1 = lin(ks[0], ks[1], STATE_LEN, H1)
    w2, b2 = lin(ks[2], ks[3], H1, H2)
    w3, b3 = lin(ks[4], ks[5], H2, OUT_LEN)
    return (w1, b1, w2, b2, w3, b3)


if __name__ == "__main__":
    key = jax.random.PRNGKey(0)
    k_params, k_x1, k_xb = jax.random.split(key, 3)

    params = init_params(k_params)
    packed = pack_params(params)

    # --- single-sample path (matches PyTorch's 1-D forward) -----------------
    x1 = jax.random.normal(k_x1, (STATE_LEN,), jnp.float32)
    y1 = jax.block_until_ready(dnetwork_forward(x1, packed))
    assert y1.shape == (OUT_LEN,)
    assert bool(jnp.all((y1[:NUM_ELECS] == 0.0) | (y1[:NUM_ELECS] == 1.0)))

    # --- small batched path --------------------------------------------------
    B = 16
    xb = jax.random.normal(k_xb, (B, STATE_LEN), jnp.float32)
    yb = jax.block_until_ready(dnetwork_forward(xb, packed))
    assert yb.shape == (B, OUT_LEN)

    y_ref, raw_ref = dnetwork_ref(xb, params)
    # regression half: numeric tolerance (folded w2@w3 + MXU f32 vs XLA matmul)
    assert bool(jnp.allclose(yb[:, NUM_ELECS:], y_ref[:, NUM_ELECS:],
                             rtol=2e-2, atol=2e-2))
    # binarized half: values are exactly {0, 1}; agree with ref away from the
    # decision boundary (rounding could flip near-zero logits)
    assert bool(jnp.all((yb[:, :NUM_ELECS] == 0.0) | (yb[:, :NUM_ELECS] == 1.0)))
    stable = jnp.abs(raw_ref[:, :NUM_ELECS]) > 1e-3
    assert bool(jnp.all(jnp.where(stable,
                                  yb[:, :NUM_ELECS] == y_ref[:, :NUM_ELECS],
                                  True)))

    # TODO(synk): the PyTorch module's `self.OUT` host-side Python-list side
    # effect has no device-kernel equivalent and is intentionally omitted.
    print("KERNEL_OK")
</pallas_src>

<mosaic_0001>
module attributes {stable_mosaic.version = 11 : i64} {
  func.func @_dnetwork_kernel(%arg0: i32, %arg1: memref<8x99xf32, #tpu.memory_space<vmem>>, %arg2: memref<256x128xf32, #tpu.memory_space<vmem>>, %arg3: memref<8x128xf32, #tpu.memory_space<vmem>>, %arg4: memref<8x10xf32, #tpu.memory_space<vmem>>) attributes {dimension_semantics = [#tpu.dimension_semantics<parallel>], iteration_bounds = array<i64: 1>, scalar_prefetch = 0 : i64, scratch_operands = 0 : i64, tpu.core_type = #tpu.core_type<tc>, window_params = [{transform_indices = @transform_0, window_bounds = array<i64: 8, 99>}, {pipeline_mode = #tpu.pipeline_mode<synchronous>, transform_indices = @transform_1, window_bounds = array<i64: 256, 128>}, {pipeline_mode = #tpu.pipeline_mode<synchronous>, transform_indices = @transform_2, window_bounds = array<i64: 8, 128>}, {transform_indices = @transform_3, window_bounds = array<i64: 8, 10>}]} {
    %c0 = arith.constant 0 : index
    %c0_0 = arith.constant 0 : index
    %0 = vector.load %arg2[%c0, %c0_0] : memref<256x128xf32, #tpu.memory_space<vmem>>, vector<128x128xf32>
    %c128 = arith.constant 128 : index
    %c0_1 = arith.constant 0 : index
    %1 = vector.load %arg2[%c128, %c0_1] : memref<256x128xf32, #tpu.memory_space<vmem>>, vector<128x128xf32>
    %c0_2 = arith.constant 0 : index
    %c0_3 = arith.constant 0 : index
    %2 = vector.load %arg3[%c0_2, %c0_3] : memref<8x128xf32, #tpu.memory_space<vmem>>, vector<1x128xf32>
    %c1 = arith.constant 1 : index
    %c0_4 = arith.constant 0 : index
    %3 = vector.load %arg3[%c1, %c0_4] : memref<8x128xf32, #tpu.memory_space<vmem>>, vector<1x128xf32>
    %c0_5 = arith.constant 0 : index
    %c0_6 = arith.constant 0 : index
    %4 = vector.load %arg1[%c0_5, %c0_6] : memref<8x99xf32, #tpu.memory_space<vmem>>, vector<8x99xf32>
    %cst = arith.constant 0.000000e+00 : f32
    %5 = vector.broadcast %cst : f32 to vector<8x29xf32>
    %6 = tpu.concatenate %4, %5 in 1 : vector<8x99xf32>, vector<8x29xf32> -> vector<8x128xf32>
    %cst_7 = arith.constant dense<0.000000e+00> : vector<8x128xf32>
    %7 = tpu.matmul %6, %0, %cst_7 {dimension_numbers = #tpu.dot_dimension_numbers<[1], [0], [0], [1], [0, 0, 1, 1], [], []>} : vector<8x128xf32>, vector<128x128xf32>, vector<8x128xf32> -> vector<8x128xf32>
    %8 = vector.broadcast %2 : vector<1x128xf32> to vector<8x128xf32>
    %9 = arith.addf %7, %8 : vector<8x128xf32>
    %cst_8 = arith.constant 0.000000e+00 : f32
    %10 = vector.broadcast %cst_8 : f32 to vector<8x128xf32>
    %11 = arith.maximumf %9, %10 : vector<8x128xf32>
    %cst_9 = arith.constant dense<0.000000e+00> : vector<8x128xf32>
    %12 = tpu.matmul %11, %1, %cst_9 {dimension_numbers = #tpu.dot_dimension_numbers<[1], [0], [0], [1], [0, 0, 1, 1], [], []>} : vector<8x128xf32>, vector<128x128xf32>, vector<8x128xf32> -> vector<8x128xf32>
    %13 = vector.broadcast %3 : vector<1x128xf32> to vector<8x128xf32>
    %14 = arith.addf %12, %13 : vector<8x128xf32>
    %15 = tpu.iota {dimensions = array<i32: 1>} : vector<8x128xi32>
    %c5_i32 = arith.constant 5 : i32
    %16 = vector.broadcast %c5_i32 : i32 to vector<8x128xi32>
    %17 = arith.cmpi sge, %15, %16 : vector<8x128xi32>
    %c10_i32 = arith.constant 10 : i32
    %18 = vector.broadcast %c10_i32 : i32 to vector<8x128xi32>
    %19 = arith.cmpi slt, %15, %18 : vector<8x128xi32>
    %20 = arith.andi %17, %19 : vector<8x128xi1>
    %cst_10 = arith.constant 0.000000e+00 : f32
    %21 = vector.broadcast %cst_10 : f32 to vector<8x128xf32>
    %22 = arith.select %20, %14, %21 : vector<8x128xi1>, vector<8x128xf32>
    %23 = arith.mulf %22, %22 : vector<8x128xf32>
    %cst_11 = arith.constant dense<0.000000e+00> : vector<8xf32>
    %24 = vector.multi_reduction <add>, %23, %cst_11 [1] : vector<8x128xf32> to vector<8xf32>
    %25 = vector.shape_cast %24 : vector<8xf32> to vector<8x1xf32>
    %cst_12 = arith.constant 9.99999996E-13 : f32
    %26 = vector.broadcast %cst_12 : f32 to vector<8x1xf32>
    %27 = arith.addf %25, %26 : vector<8x1xf32>
    %28 = math.rsqrt %27 : vector<8x1xf32>
    %cst_13 = arith.constant 0.000000e+00 : f32
    %29 = vector.broadcast %cst_13 : f32 to vector<8x128xf32>
    %30 = arith.cmpf ole, %14, %29 : vector<8x128xf32>
    %cst_14 = arith.constant 0.000000e+00 : f32
    %cst_15 = arith.constant 1.000000e+00 : f32
    %31 = vector.broadcast %cst_14 : f32 to vector<8x128xf32>
    %32 = vector.broadcast %cst_15 : f32 to vector<8x128xf32>
    %33 = arith.select %30, %31, %32 : vector<8x128xi1>, vector<8x128xf32>
    %34 = vector.broadcast %28 : vector<8x1xf32> to vector<8x128xf32>
    %35 = arith.mulf %14, %34 : vector<8x128xf32>
    %cst_16 = arith.constant 1.000000e+00 : f32
    %36 = vector.broadcast %cst_16 : f32 to vector<8x128xf32>
    %37 = arith.addf %35, %36 : vector<8x128xf32>
    %cst_17 = arith.constant 2.000000e+01 : f32
    %38 = vector.broadcast %cst_17 : f32 to vector<8x128xf32>
    %39 = arith.mulf %38, %37 : vector<8x128xf32>
    %cst_18 = arith.constant 6.000000e+01 : f32
    %40 = vector.broadcast %cst_18 : f32 to vector<8x128xf32>
    %41 = arith.addf %39, %40 : vector<8x128xf32>
    %42 = arith.select %20, %41, %33 : vector<8x128xi1>, vector<8x128xf32>
    %43 = vector.extract_strided_slice %42 {offsets = [0, 0], sizes = [8, 10], strides = [1, 1]} : vector<8x128xf32> to vector<8x10xf32>
    %c0_19 = arith.constant 0 : index
    %c0_20 = arith.constant 0 : index
    %44 = vector.load %arg4[%c0_19, %c0_20] : memref<8x10xf32, #tpu.memory_space<vmem>>, vector<8x10xf32>
    tpu.vector_store %arg4[%c0_19, %c0_20], %43 {strides = array<i32>} : memref<8x10xf32, #tpu.memory_space<vmem>>, vector<8x10xf32>,
    return
  }
  func.func @transform_0(%arg0: i32) -> (i32, i32) {
    %c0_i32 = arith.constant 0 : i32
    %c0_i32_0 = arith.constant 0 : i32
    return %arg0, %c0_i32 : i32, i32
  }
  func.func @transform_1(%arg0: i32) -> (i32, i32) {
    %c0_i32 = arith.constant 0 : i32
    %c0_i32_0 = arith.constant 0 : i32
    %c0_i32_1 = arith.constant 0 : i32
    return %c0_i32, %c0_i32_0 : i32, i32
  }
  func.func @transform_2(%arg0: i32) -> (i32, i32) {
    %c0_i32 = arith.constant 0 : i32
    %c0_i32_0 = arith.constant 0 : i32
    %c0_i32_1 = arith.constant 0 : i32
    return %c0_i32, %c0_i32_0 : i32, i32
  }
  func.func @transform_3(%arg0: i32) -> (i32, i32) {
    %c0_i32 = arith.constant 0 : i32
    %c0_i32_0 = arith.constant 0 : i32
    return %arg0, %c0_i32 : i32, i32
  }
}

</mosaic_0001>

<bundles_post_ra>
// kernel: tpu_custom_call.1
= control target key start
LH: loop header
LB: loop body
LE: loop exit
PB: predicated region body
PF: predicated region fallthrough
CT: control target
= control target key end

     0   :  { %8 = vsyncpa [#allocation3], 0  ;;  %s637_s0 = inlined_call_operand.hbm [shape: f32[8,99], index: 0, kind: input, shape index: {}]   ;;  %s638_s1 = inlined_call_operand.hbm [shape: f32[256,128], index: 1, kind: input, shape index: {}]   ;;  %s639_s2 = inlined_call_operand.hbm [shape: f32[8,128], index: 2, kind: input, shape index: {}]   ;;  %s640_s3 = inlined_call_operand.hbm [shape: f32[8,10], index: 3, kind: output, shape index: {}]  }
   0x1   :  { %9 = vsyncpa [#allocation6], 0 }
   0x2   :  { %10 = vsyncpa [#allocation4], 0  ;;  %s535_s12 = smov [#allocation5]   ;;  %s441_s16 = scalar_lea.hbm %s638_s1, 4096 }
   0x3   :  { %s26_s13 = sshll.u32 %s535_s12, 4  ;;  %p442_p0 = scmp.ne.s32.totalorder %s638_s1, %s441_s16  ;;  %s27_s13 = int_to_ptr.vmem [resolvable:$true] %s26_s13 }
   0x4   :  { %p445_p1 = scmp.lt.u32.totalorder %s441_s16, %s638_s1 }
   0x6   :  { %p447_p2 = pnand %p445_p1, %p442_p0 }
   0x8   :  { %450 = shalt.err (!%p447_p2)
}
   0x9   :  { %s451_s21 = scalar_lea.vmem %s27_s13, 4096  ;;  %p456_p4 = scmp.lt.s32.totalorder %s27_s13, %s27_s13 }
   0xa   :  { %p452_p3 = scmp.ne.s32.totalorder %s27_s13, %s451_s21  ;;  %p457_p5 = scmp.lt.s32.totalorder %s451_s21, %s451_s21 }
   0xc   :  { %p458_p6 = por %p457_p5, %p456_p4 }
   0xe   :  { %p459_p7 = pnand %p458_p6, %p452_p3 }
  0x10   :  { %462 = shalt.err (!%p459_p7)
}
  0x11   :  { %s536_s22 = smov 128   ;;  %s537_s23 = smov 8  }
  0x12   :  { %32 = dma.hbm_to_vmem [thread:$0]  %s638_s1, 4096, %s27_s13, [#allocation6], %s536_s22, %s536_s22, %s537_s23  }
  0x13   :  { %s538_s26 = smov [#allocation2]   ;;  %s539_s28 = smov [#allocation7]  }
  0x14   :  { %s17_s27 = sshll.u32 %s538_s26, 4  ;;  %s39_s29 = sshll.u32 %s539_s28, 4  ;;  %s18_s27 = int_to_ptr.vmem [resolvable:$true] %s17_s27  ;;  %s40_s29 = int_to_ptr.vmem [resolvable:$true] %s39_s29 }
  0x15   :  { %s463_s5 = scalar_lea.hbm %s637_s0, 128 }
  0x16   :  { %p464_p8 = scmp.ne.s32.totalorder %s637_s0, %s463_s5  ;;  %p467_p9 = scmp.lt.u32.totalorder %s463_s5, %s637_s0 }
  0x18   :  { %p469_p10 = pnand %p467_p9, %p464_p8 }
  0x1a   :  { %472 = shalt.err (!%p469_p10)
}
  0x1b   :  { %s473_s1 = scalar_lea.vmem %s18_s27, 128  ;;  %p478_p12 = scmp.lt.s32.totalorder %s18_s27, %s18_s27 }
  0x1c   :  { %p474_p11 = scmp.ne.s32.totalorder %s18_s27, %s473_s1  ;;  %p479_p13 = scmp.lt.s32.totalorder %s473_s1, %s473_s1 }
  0x1e   :  { %p480_p0 = por %p479_p13, %p478_p12 }
  0x20   :  { %p481_p1 = pnand %p480_p0, %p474_p11 }
  0x22   :  { %484 = shalt.err (!%p481_p1)
}
  0x23   :  { %20 = dma.hbm_to_vmem [thread:$0]  %s637_s0, 128, %s18_s27, [#allocation3]  }
  0x24   :  { %s485_s14 = scalar_lea.hbm %s639_s2, 128 }
  0x25   :  { %p486_p2 = scmp.ne.s32.totalorder %s639_s2, %s485_s14  ;;  %p489_p3 = scmp.lt.u32.totalorder %s485_s14, %s639_s2 }
  0x27   :  { %p491_p4 = pnand %p489_p3, %p486_p2 }
  0x29   :  { %494 = shalt.err (!%p491_p4)
}
  0x2a   :  { %s495_s19 = scalar_lea.vmem %s40_s29, 128  ;;  %p500_p6 = scmp.lt.s32.totalorder %s40_s29, %s40_s29 }
  0x2b   :  { %p496_p5 = scmp.ne.s32.totalorder %s40_s29, %s495_s19  ;;  %p501_p7 = scmp.lt.s32.totalorder %s495_s19, %s495_s19 }
  0x2d   :  { %p502_p8 = por %p501_p7, %p500_p6 }
  0x2f   :  { %p503_p9 = pnand %p502_p8, %p496_p5 }
  0x31   :  { %506 = shalt.err (!%p503_p9)
}
  0x32   :  { %42 = dma.hbm_to_vmem [thread:$0]  %s639_s2, 128, %s40_s29, [#allocation6]  }
  0x33   :  { %529 = dma.done.wait [#allocation3], 128  }
  0x34   :  { %530 = vsyncadd [#allocation3], 4294967168 }
  0x35   :  { %531 = dma.done.wait [#allocation6], 4224  }
  0x36   :  { %532 = vsyncadd [#allocation6], 4294963072  ;;  %v540_v0 = vmov 0.0|0.0   ;;  %vm541_vm0 = vmmov 0   ;;  %v542_v1 = vmov 0.0   ;;  %v52_v2 = vld [vmem:[#allocation5] sm:$0xff]  ;;  %v238_v56 = vlaneseq }
  0x37   :  { %381 = vmatprep.subr.bf16.mxu0 %v540_v0  ;;  %343 = vmatprep.mubr.msk.f32.mxu0 %vm541_vm0, %v542_v1  ;;  %v53_v3 = vld [vmem:[#allocation5 + $0x8] sm:$0xff]  ;;  %v54_v4 = vld [vmem:[#allocation5 + $0x10] sm:$0xff]  ;;  %v55_v6 = vld [vmem:[#allocation5 + $0x18] sm:$0xff]  ;;  %vm87_vm1 = vcmask 809984   ;;  %s543_s2 = smov [#allocation8]   ;;  %vm256_vm6 = vcmask 80896  }
  0x38   :  { %405 = vmatprep.subr.bf16.mxu1 %v540_v0  ;;  %378 = vmatprep.mubr.msk.f32.mxu1 %vm541_vm0, %v542_v1  ;;  %v382_v5 = vpack.c.bf16 %v53_v3, %v52_v2  ;;  %v385_v7 = vpack.c.bf16 %v55_v6, %v54_v4  ;;  %v56_v8 = vld [vmem:[#allocation5 + $0x20] sm:$0xff]  ;;  %v57_v9 = vld [vmem:[#allocation5 + $0x28] sm:$0xff]  ;;  %v70_v12 = vld [vmem:[#allocation5 + $0x90] sm:$0xff]  ;;  %v239_v57 = vand.u32 127, %v238_v56  ;;  %s264_s21 = sshll.u32 %s543_s2, 4  ;;  %s265_s21 = int_to_ptr.vmem [resolvable:$true] %s264_s21 }
  0x39   :  { %v68_v10 = vld [vmem:[#allocation5 + $0x80] sm:$0xff]  ;;  %v69_v11 = vld [vmem:[#allocation5 + $0x88] sm:$0xff]  ;;  %v71_v13 = vld [vmem:[#allocation5 + $0x98] sm:$0xff]  ;;  %v388_v14 = vpack.c.bf16 %v57_v9, %v56_v8  ;;  %v544_v8 = vmov 1.0   ;;  %s507_s22 = scalar_lea.vmem %s265_s21, 128  ;;  %p512_p11 = scmp.lt.s32.totalorder %s265_s21, %s265_s21 }
  0x3a   :  { %383 = vmatpush3.bf16.msra.mxu0 %v382_v5  ;;  %v406_v15 = vpack.c.bf16 %v69_v11, %v68_v10  ;;  %v58_v16 = vld [vmem:[#allocation5 + $0x30] sm:$0xff]  ;;  %v59_v17 = vld [vmem:[#allocation5 + $0x38] sm:$0xff]  ;;  %v409_v18 = vpack.c.bf16 %v71_v13, %v70_v12  ;;  %v72_v19 = vld [vmem:[#allocation5 + $0xa0] sm:$0xff]  ;;  %vm240_vm2 = vcmp.ge.s32.totalorder %v239_v57, 5  ;;  %vm241_vm3 = vcmp.lt.s32.totalorder %v239_v57, 10  ;;  %p508_p10 = scmp.ne.s32.totalorder %s265_s21, %s507_s22  ;;  %p513_p12 = scmp.lt.s32.totalorder %s507_s22, %s507_s22 }
  0x3b   :  { %384 = vmatprep.subr.bf16.mxu0 %v540_v0  ;;  %v73_v20 = vld [vmem:[#allocation5 + $0xa8] sm:$0xff]  ;;  %v391_v21 = vpack.c.bf16 %v59_v17, %v58_v16  ;;  %v60_v22 = vld [vmem:[#allocation5 + $0x40] sm:$0xff]  ;;  %v74_v25 = vld [vmem:[#allocation5 + $0xb0] sm:$0xff] }
  0x3c   :  { %407 = vmatpush3.bf16.msra.mxu1 %v406_v15  ;;  %v61_v23 = vld [vmem:[#allocation5 + $0x48] sm:$0xff]  ;;  %v412_v24 = vpack.c.bf16 %v73_v20, %v72_v19  ;;  %v75_v26 = vld [vmem:[#allocation5 + $0xb8] sm:$0xff]  ;;  %v62_v28 = vld [vmem:[#allocation5 + $0x50] sm:$0xff]  ;;  %p514_p13 = por %p513_p12, %p512_p11 }
  0x3d   :  { %408 = vmatprep.subr.bf16.mxu1 %v540_v0  ;;  %v394_v27 = vpack.c.bf16 %v61_v23, %v60_v22  ;;  %v63_v29 = vld [vmem:[#allocation5 + $0x58] sm:$0xff]  ;;  %v415_v30 = vpack.c.bf16 %v75_v26, %v74_v25  ;;  %v76_v31 = vld [vmem:[#allocation5 + $0xc0] sm:$0xff]  ;;  %v77_v32 = vld [vmem:[#allocation5 + $0xc8] sm:$0xff] }
  0x3e   :  { %386 = vmatpush3.bf16.msra.mxu0 %v385_v7  ;;  %v397_v33 = vpack.c.bf16 %v63_v29, %v62_v28  ;;  %v64_v34 = vld [vmem:[#allocation5 + $0x60] sm:$0xff]  ;;  %v65_v35 = vld [vmem:[#allocation5 + $0x68] sm:$0xff]  ;;  %v418_v36 = vpack.c.bf16 %v77_v32, %v76_v31  ;;  %v78_v37 = vld [vmem:[#allocation5 + $0xd0] sm:$0xff]  ;;  %p515_p0 = pnand %p514_p13, %p508_p10 }
  0x3f   :  { %387 = vmatprep.subr.bf16.mxu0 %v540_v0  ;;  %v79_v38 = vld [vmem:[#allocation5 + $0xd8] sm:$0xff]  ;;  %v400_v39 = vpack.c.bf16 %v65_v35, %v64_v34  ;;  %v66_v40 = vld [vmem:[#allocation5 + $0x70] sm:$0xff]  ;;  %v80_v43 = vld [vmem:[#allocation5 + $0xe0] sm:$0xff] }
  0x40   :  { %410 = vmatpush3.bf16.msra.mxu1 %v409_v18  ;;  %v67_v41 = vld [vmem:[#allocation5 + $0x78] sm:$0xff]  ;;  %v421_v42 = vpack.c.bf16 %v79_v38, %v78_v37  ;;  %v81_v44 = vld [vmem:[#allocation5 + $0xe8] sm:$0xff]  ;;  %v82_v48 = vld [vmem:[#allocation5 + $0xf0] sm:$0xff] }
  0x41   :  { %411 = vmatprep.subr.bf16.mxu1 %v540_v0  ;;  %v403_v45 = vpack.c.bf16 %v67_v41, %v66_v40  ;;  %v424_v46 = vpack.c.bf16 %v81_v44, %v80_v43  ;;  %v86_v47 = vld [vmem:[#allocation2] sm:$0xff]  ;;  %v274_v51 = vld [vmem:[#allocation7] ss:$0 sm:$0xff]  ;;  %v276_v58 = vld [vmem:[#allocation7 + $0x1] ss:$0 sm:$0xff] }
  0x42   :  { %389 = vmatpush3.bf16.msra.mxu0 %v388_v14  ;;  %v83_v49 = vld [vmem:[#allocation5 + $0xf8] sm:$0xff]  ;;  %vm617_vm4 = vmand %vm240_vm2, %vm241_vm3 }
  0x43   :  { %390 = vmatprep.subr.bf16.mxu0 %v540_v0  ;;  %v427_v50 = vpack.c.bf16 %v83_v49, %v82_v48 }
  0x44   :  { %413 = vmatpush3.bf16.msra.mxu1 %v412_v24 }
  0x45   :  { %414 = vmatprep.subr.bf16.mxu1 %v540_v0 }
  0x46   :  { %392 = vmatpush3.bf16.msra.mxu0 %v391_v21 }
  0x47   :  { %393 = vmatprep.subr.bf16.mxu0 %v540_v0 }
  0x48   :  { %416 = vmatpush3.bf16.msra.mxu1 %v415_v30 }
  0x49   :  { %417 = vmatprep.subr.bf16.mxu1 %v540_v0 }
  0x4a   :  { %395 = vmatpush3.bf16.msra.mxu0 %v394_v27 }
  0x4b   :  { %396 = vmatprep.subr.bf16.mxu0 %v540_v0 }
  0x4c   :  { %419 = vmatpush3.bf16.msra.mxu1 %v418_v36 }
  0x4d   :  { %420 = vmatprep.subr.bf16.mxu1 %v540_v0 }
  0x4e   :  { %398 = vmatpush3.bf16.msra.mxu0 %v397_v33 }
  0x4f   :  { %399 = vmatprep.subr.bf16.mxu0 %v540_v0 }
  0x50   :  { %422 = vmatpush3.bf16.msra.mxu1 %v421_v42 }
  0x51   :  { %423 = vmatprep.subr.bf16.mxu1 %v540_v0 }
  0x52   :  { %401 = vmatpush3.bf16.msra.mxu0 %v400_v39 }
  0x53   :  { %402 = vmatprep.subr.bf16.mxu0 %v540_v0 }
  0x54   :  { %425 = vmatpush3.bf16.msra.mxu1 %v424_v46 }
  0x55   :  { %426 = vmatprep.subr.bf16.mxu1 %v540_v0 }
  0x56   :  { %404 = vmatpush3.bf16.msra.mxu0 %v403_v45 }
  0x58   :  { %428 = vmatpush3.bf16.msra.mxu1 %v427_v50 }
  0x59   :  { %344 = vmatmul.mubr.msk.f32.vlgmr.msra.gmra.mrb[0].mxu0 %vm87_vm1, %v86_v47 }
 0x12c   :  { %v159_v52 = vpop.f32.mrb[0].mxu0 }
 0x12d   :  { %v160_v53 = vadd.f32 %v274_v51, %v159_v52  ;;  %v345_v54 = vpop.f32.mrb[1].mxu0 }
 0x12f   :  { %v163_v55 = vmax.f32 %v160_v53, 0.0 }
 0x131   :  { %379 = vmatmul.mubr.f32.vlgmr.msra.gmra.mrb[0].mxu1 %v163_v55 }
 0x204   :  { %v234_v59 = vpop.f32.mrb[0].mxu1 }
 0x205   :  { %v235_v61 = vadd.f32 %v276_v58, %v234_v59  ;;  %v380_v62 = vpop.f32.mrb[1].mxu1 }
 0x207   :  { %v243_v63 = vsel %vm617_vm4, %v235_v61, 0.0  ;;  %vm249_vm5 = vcmp.le.f32.partialorder %v235_v61, 0.0 }
 0x208   :  { %v244_v0 = vmul.f32 %v243_v63, %v243_v63  ;;  %v250_v9 = vsel %vm249_vm5, 0.0, %v544_v8 }
 0x20a   :  { %245 = vadd.xlane.f32.xlu0 %v244_v0 }
 0x297   :  { %v246_v1 = vpop.xlane.xlu0 %245 }
 0x298   :  { %v247_v2 = vadd.f32 1e-12, %v246_v1 }
 0x29a   :  { %439 = vrsqrt.f32 %v247_v2 }
 0x2a4   :  { %v440_v3 = vpop.eup %439 }
 0x2a5   :  { %v251_v4 = vmul.f32 %v440_v3, %v235_v61 }
 0x2a7   :  { %v252_v5 = vadd.f32 1.0, %v251_v4 }
 0x2a9   :  { %v253_v6 = vmul.f32 20.0, %v252_v5 }
 0x2ab   :  { %v254_v7 = vadd.f32 60.0, %v253_v6 }
 0x2ad   :  { %v255_v10 = vsel %vm617_vm4, %v254_v7, %v250_v9 }
 0x2ae   :  { %257 = vst.msk [vmem:[#allocation8] sm:$0xff] %vm256_vm6, %v255_v10 }
 0x2af   :  { %518 = shalt.err (!%p515_p0)
}
 0x2b0   :  { %s519_s25 = scalar_lea.hbm %s640_s3, 128 }
 0x2b1   :  { %p520_p1 = scmp.ne.s32.totalorder %s640_s3, %s519_s25  ;;  %p523_p2 = scmp.lt.u32.totalorder %s519_s25, %s640_s3 }
 0x2b3   :  { %p525_p3 = pnand %p523_p2, %p520_p1 }
 0x2b5   :  { %528 = shalt.err (!%p525_p3)
}
 0x2b6   :  { %267 = dma.vmem_to_hbm [thread:$0]  %s265_s21, 128, %s640_s3, [#allocation4]  }
 0x2b7   :  { %533 = dma.done.wait [#allocation4], 128  }
 0x2b8   :  { %534 = vsyncadd [#allocation4], 4294967168 }
 0x2b9   :  { %271 = vsyncpa [#allocation3], 1 }
 0x2ba   :  { %272 = vsyncpa [#allocation6], 1 }
 0x2bb   :  { %273 = vsyncpa [#allocation4], 1 }

</bundles_post_ra>
